<compile_context>
chip_gen: v5e
topology: v5e:2x2
jax: 0.10.0
libtpu: 0.0.40
codegen_flags: <defaults>
</compile_context>

<pallas_src>
import functools
import math

import jax
import jax.numpy as jnp
from jax.experimental import pallas as pl
from jax.experimental.pallas import tpu as pltpu

# ----- generation-dependent knobs -------------------------------------------
# Defaults sized for the tightest budget (v7x: 64 MiB physical VMEM).
# On v6e/v5e (128 MiB VMEM) raise VMEM_LIMIT to ~64-96 MiB and sweep
# TM/TN/TK up to 512/512/1024 for the large matmuls.
VMEM_LIMIT = 32 * 1024 * 1024
TM, TN, TK = 256, 256, 512
LN_EPS = 1e-5                      # PyTorch LayerNorm default
EMB_TOKENS_PER_BLOCK = 8           # tokens gathered per embedding grid step


def _round_up(x, m):
    return (x + m - 1) // m * m


def _fit_tile(dim, target):
    """Largest tile <= target that divides dim (full dim if dim <= target).
    Lane dims in this model are either <= target (full-dim blocks are legal)
    or multiples of 128.
    # TODO(synk): pad awkward lane dims (non multiples of 128, e.g. odd vocab
    # sizes) instead of shrinking the tile, to keep MXU tiles full.
    """
    t = min(dim, target)
    while dim % t:
        t -= 1
    return t


def _row_plan(M, target):
    """Row-tile (multiple of 8) and padded row count."""
    tm = min(target, _round_up(M, 8))
    return tm, _round_up(M, tm)


def _pad_rows(x, rows):
    if x.shape[0] == rows:
        return x
    return jnp.pad(x, ((0, rows - x.shape[0]),) + ((0, 0),) * (x.ndim - 1))


# ------------------------------ Pallas kernels ------------------------------

def _linear_kernel(x_ref, w_ref, b_ref, o_ref, acc_ref, *, relu):
    """y = x @ W + b (optional ReLU). x/W bf16 tiles, f32 accumulation."""
    k = pl.program_id(2)

    @pl.when(k == 0)
    def _():
        acc_ref[...] = jnp.zeros_like(acc_ref)

    acc_ref[...] += jnp.dot(x_ref[...], w_ref[...],
                            preferred_element_type=jnp.float32)

    @pl.when(k == pl.num_programs(2) - 1)
    def _():
        y = acc_ref[...] + b_ref[...]
        if relu:
            y = jnp.maximum(y, 0.0)
        o_ref[...] = y.astype(o_ref.dtype)


def _split_linear_kernel(x_ref, w_ref, b_ref, *refs, nsplit):
    """Fused [M,K]x[K,nsplit*N] matmul emitting nsplit lane-dense outputs."""
    out_refs, acc_ref = refs[:nsplit], refs[nsplit]
    k = pl.program_id(1)

    @pl.when(k == 0)
    def _():
        acc_ref[...] = jnp.zeros_like(acc_ref)

    acc_ref[...] += jnp.dot(x_ref[...], w_ref[...],
                            preferred_element_type=jnp.float32)

    @pl.when(k == pl.num_programs(1) - 1)
    def _():
        y = acc_ref[...] + b_ref[...]
        n = out_refs[0].shape[-1]
        for s, oref in enumerate(out_refs):
            oref[...] = y[:, s * n:(s + 1) * n].astype(oref.dtype)


def _proj_res_ln_kernel(x_ref, w_ref, b_ref, res_ref, g_ref, be_ref,
                        o_ref, acc_ref):
    """LayerNorm(res + x @ W + b); full-E (lane-dense) output blocks."""
    k = pl.program_id(1)

    @pl.when(k == 0)
    def _():
        acc_ref[...] = jnp.zeros_like(acc_ref)

    acc_ref[...] += jnp.dot(x_ref[...], w_ref[...],
                            preferred_element_type=jnp.float32)

    @pl.when(k == pl.num_programs(1) - 1)
    def _():
        h = acc_ref[...] + b_ref[...] + res_ref[...].astype(jnp.float32)
        mu = jnp.mean(h, axis=-1, keepdims=True)
        var = jnp.mean(jnp.square(h - mu), axis=-1, keepdims=True)
        y = (h - mu) * jax.lax.rsqrt(var + LN_EPS) * g_ref[...] + be_ref[...]
        o_ref[...] = y.astype(o_ref.dtype)


def _attn_kernel(q_ref, k_ref, v_ref, o_ref, *, n_head, scale):
    """Softmax attention for one batch element; heads iterated in-kernel and
    each head's result is stored straight into its lane slice of o_ref."""
    q = q_ref[0]                       # [Sq, E] bf16
    k = k_ref[0]                       # [Sk, E] bf16
    v = v_ref[0]
    dh = q.shape[-1] // n_head
    for h in range(n_head):
        sl = slice(h * dh, (h + 1) * dh)
        # contract the head dim of both operands (no explicit k.T relayout)
        s = jax.lax.dot_general(q[:, sl], k[:, sl], (((1,), (1,)), ((), ())),
                                preferred_element_type=jnp.float32) * scale
        m = jnp.max(s, axis=-1, keepdims=True)
        p = jnp.exp(s - m)
        denom = jnp.sum(p, axis=-1, keepdims=True)
        p = p * pl.reciprocal(denom, approx=True)
        oh = jnp.dot(p.astype(jnp.bfloat16), v[:, sl],
                     preferred_element_type=jnp.float32)
        o_ref[0, :, sl] = oh.astype(o_ref.dtype)
    # TODO(synk): flash-style Sk tiling with online softmax (plus a head grid
    # axis when head_dim is a multiple of 128) for long memory sequences so
    # K/V never have to be fully VMEM-resident on v7x's 64 MiB.


def _embed_pe_kernel(ids_ref, tok_hbm, pe_ref, o_ref, buf, sems, *,
                     block_tokens):
    """Batched token-embedding gather (manual row DMAs from HBM) fused with
    the positional-encoding add.  ids are scalar-prefetched into SMEM."""
    base = pl.program_id(0) * block_tokens
    for t in range(block_tokens):
        row = ids_ref[base + t]
        pltpu.make_async_copy(tok_hbm.at[pl.ds(row, 1), :],
                              buf.at[t:t + 1, :], sems.at[t]).start()
    for t in range(block_tokens):
        pltpu.make_async_copy(tok_hbm.at[pl.ds(0, 1), :],
                              buf.at[t:t + 1, :], sems.at[t]).wait()
    o_ref[...] = (buf[...] + pe_ref[...]).astype(o_ref.dtype)


# ------------------------------ kernel wrappers ------------------------------

def linear(x2d, w_t, b, *, relu=False, out_dtype=jnp.bfloat16,
           tm=TM, tn=TN, tk=TK):
    """y = x @ W + b with W pre-transposed [K, N] bf16; bf16 output default."""
    x2d = x2d.astype(jnp.bfloat16)
    M, K = x2d.shape
    Kw, N = w_t.shape
    assert K == Kw
    tm, Mp = _row_plan(M, tm)
    tn, tk = _fit_tile(N, tn), _fit_tile(K, tk)
    out = pl.pallas_call(
        functools.partial(_linear_kernel, relu=relu),
        out_shape=jax.ShapeDtypeStruct((Mp, N), out_dtype),
        grid=(Mp // tm, N // tn, K // tk),
        in_specs=[pl.BlockSpec((tm, tk), lambda i, j, k: (i, k)),
                  pl.BlockSpec((tk, tn), lambda i, j, k: (k, j)),
                  pl.BlockSpec((1, tn), lambda i, j, k: (0, j))],
        out_specs=pl.BlockSpec((tm, tn), lambda i, j, k: (i, j)),
        scratch_shapes=[pltpu.VMEM((tm, tn), jnp.float32)],
        compiler_params=pltpu.CompilerParams(
            dimension_semantics=("parallel", "parallel", "arbitrary"),
            vmem_limit_bytes=VMEM_LIMIT),
    )(_pad_rows(x2d, Mp), w_t, b.reshape(1, N).astype(jnp.float32))
    return out[:M] if Mp != M else out


def split_linear(x2d, w_t, b, nsplit, *, out_dtype=jnp.bfloat16, tm=TM, tk=TK):
    """x @ W + b with W = [K, nsplit*N]; emits nsplit separate [M, N] outputs
    (lane-dense stores -> no XLA-side slicing of a fused result)."""
    x2d = x2d.astype(jnp.bfloat16)
    M, K = x2d.shape
    _, Ntot = w_t.shape
    N = Ntot // nsplit
    tm, Mp = _row_plan(M, tm)
    tk = _fit_tile(K, tk)
    outs = pl.pallas_call(
        functools.partial(_split_linear_kernel, nsplit=nsplit),
        out_shape=tuple(jax.ShapeDtypeStruct((Mp, N), out_dtype)
                        for _ in range(nsplit)),
        grid=(Mp // tm, K // tk),
        in_specs=[pl.BlockSpec((tm, tk), lambda i, k: (i, k)),
                  pl.BlockSpec((tk, Ntot), lambda i, k: (k, 0)),
                  pl.BlockSpec((1, Ntot), lambda i, k: (0, 0))],
        out_specs=tuple(pl.BlockSpec((tm, N), lambda i, k: (i, 0))
                        for _ in range(nsplit)),
        scratch_shapes=[pltpu.VMEM((tm, Ntot), jnp.float32)],
        compiler_params=pltpu.CompilerParams(
            dimension_semantics=("parallel", "arbitrary"),
            vmem_limit_bytes=VMEM_LIMIT),
    )(_pad_rows(x2d, Mp), w_t, b.reshape(1, Ntot).astype(jnp.float32))
    if Mp != M:
        outs = tuple(o[:M] for o in outs)
    return outs


def proj_residual_ln(x2d, w_t, b, res2d, gamma, beta, *,
                     out_dtype=jnp.bfloat16, tm=TM, tk=TK):
    """LayerNorm(res + x @ W + b); tiled over rows and the contraction dim."""
    x2d = x2d.astype(jnp.bfloat16)
    res2d = res2d.astype(jnp.bfloat16)
    M, K = x2d.shape
    _, N = w_t.shape
    tm, Mp = _row_plan(M, tm)
    tk = _fit_tile(K, tk)
    out = pl.pallas_call(
        _proj_res_ln_kernel,
        out_shape=jax.ShapeDtypeStruct((Mp, N), out_dtype),
        grid=(Mp // tm, K // tk),
        in_specs=[pl.BlockSpec((tm, tk), lambda i, k: (i, k)),
                  pl.BlockSpec((tk, N), lambda i, k: (k, 0)),
                  pl.BlockSpec((1, N), lambda i, k: (0, 0)),
                  pl.BlockSpec((tm, N), lambda i, k: (i, 0)),
                  pl.BlockSpec((1, N), lambda i, k: (0, 0)),
                  pl.BlockSpec((1, N), lambda i, k: (0, 0))],
        out_specs=pl.BlockSpec((tm, N), lambda i, k: (i, 0)),
        scratch_shapes=[pltpu.VMEM((tm, N), jnp.float32)],
        compiler_params=pltpu.CompilerParams(
            dimension_semantics=("parallel", "arbitrary"),
            vmem_limit_bytes=VMEM_LIMIT),
        # TODO(synk): on v7x, mark the constant bias/gamma/beta blocks with
        # pipeline_mode=pl.Buffered(1) to drop their second pipeline buffer.
    )(_pad_rows(x2d, Mp), w_t, b.reshape(1, N).astype(jnp.float32),
      _pad_rows(res2d, Mp), gamma.reshape(1, N).astype(jnp.float32),
      beta.reshape(1, N).astype(jnp.float32))
    return out[:M] if Mp != M else out


def attention(q, k, v, n_head, scale):
    """q: [B,Sq,E] bf16, k/v: [B,Sk,E] bf16 -> [B,Sq,E] bf16."""
    B, Sq, E = q.shape
    Sk = k.shape[1]
    return pl.pallas_call(
        functools.partial(_attn_kernel, n_head=n_head, scale=scale),
        out_shape=jax.ShapeDtypeStruct((B, Sq, E), jnp.bfloat16),
        grid=(B,),
        in_specs=[pl.BlockSpec((1, Sq, E), lambda b: (b, 0, 0)),
                  pl.BlockSpec((1, Sk, E), lambda b: (b, 0, 0)),
                  pl.BlockSpec((1, Sk, E), lambda b: (b, 0, 0))],
        out_specs=pl.BlockSpec((1, Sq, E), lambda b: (b, 0, 0)),
        compiler_params=pltpu.CompilerParams(
            dimension_semantics=("parallel",),
            vmem_limit_bytes=VMEM_LIMIT),
    )(q, k, v)


def embed_pos(text_ids, tok_emb, pe):
    """Fused batched token-embedding gather + positional-encoding add."""
    B, St = text_ids.shape
    V, E = tok_emb.shape
    M = B * St
    T = EMB_TOKENS_PER_BLOCK
    Mp = _round_up(M, T)
    ids = jnp.pad(text_ids.reshape(-1).astype(jnp.int32), (0, Mp - M))
    pe_rows = _pad_rows(jnp.tile(pe[:St], (B, 1)), Mp)          # [Mp, E] f32
    out = pl.pallas_call(
        functools.partial(_embed_pe_kernel, block_tokens=T),
        out_shape=jax.ShapeDtypeStruct((Mp, E), jnp.bfloat16),
        grid_spec=pltpu.PrefetchScalarGridSpec(
            num_scalar_prefetch=1,
            grid=(Mp // T,),
            in_specs=[pl.BlockSpec(memory_space=pl.ANY),        # emb table, HBM
                      pl.BlockSpec((T, E), lambda i, ids: (i, 0))],
            out_specs=pl.BlockSpec((T, E), lambda i, ids: (i, 0)),
            scratch_shapes=[pltpu.VMEM((T, E), tok_emb.dtype),
                            pltpu.SemaphoreType.DMA((T,))]),
        compiler_params=pltpu.CompilerParams(
            dimension_semantics=("arbitrary",),
            vmem_limit_bytes=VMEM_LIMIT),
    )(ids, tok_emb, pe_rows)
    out = out[:M] if Mp != M else out
    return out.reshape(B, St, E)


# ------------------------- model (glue around kernels) -----------------------

def make_positional_encoding(max_len, d_model):
    position = jnp.arange(max_len, dtype=jnp.float32)[:, None]
    div_term = jnp.exp(jnp.arange(0, d_model, 2, dtype=jnp.float32)
                       * (-math.log(10000.0) / d_model))
    pe = jnp.zeros((max_len, d_model), dtype=jnp.float32)
    pe = pe.at[:, 0::2].set(jnp.sin(position * div_term))
    pe = pe.at[:, 1::2].set(jnp.cos(position * div_term))
    return pe


def init_params(key, cfg):
    """Parameters created directly in kernel-friendly layout: weights
    pre-transposed to [in, out] and pre-cast to bf16 once."""
    E, A, V, L = (cfg["n_embd"], cfg["audio_latent_dim"],
                  cfg["vocab_size"], cfg["n_layer"])
    F = 4 * E
    keys = iter(jax.random.split(key, 8 + 16 * L))

    def nrm(shape, scale=0.02):
        return (scale * jax.random.normal(next(keys), shape)).astype(jnp.float32)

    tok_emb = nrm((V, E))                                  # f32, gather table
    p = {
        "audio_proj_w": nrm((A, E)).astype(jnp.bfloat16),  # [in, out]
        "audio_proj_b": nrm((E,)),
        "tok_emb": tok_emb,
        "lm_head_w": jnp.transpose(tok_emb).astype(jnp.bfloat16),  # tied, [E,V]
        "lm_head_b": nrm((V,)),
        "pe": make_positional_encoding(500, E),
        "layers": [],
    }
    for _ in range(L):
        p["layers"].append({
            "sa_qkv_w": nrm((E, 3 * E)).astype(jnp.bfloat16), "sa_qkv_b": nrm((3 * E,)),
            "sa_out_w": nrm((E, E)).astype(jnp.bfloat16),     "sa_out_b": nrm((E,)),
            "ca_q_w":   nrm((E, E)).astype(jnp.bfloat16),     "ca_q_b":   nrm((E,)),
            "ca_kv_w":  nrm((E, 2 * E)).astype(jnp.bfloat16), "ca_kv_b":  nrm((2 * E,)),
            "ca_out_w": nrm((E, E)).astype(jnp.bfloat16),     "ca_out_b": nrm((E,)),
            "w1": nrm((E, F)).astype(jnp.bfloat16), "b1": nrm((F,)),
            "w2": nrm((F, E)).astype(jnp.bfloat16), "b2": nrm((E,)),
            "ln1_g": jnp.ones((E,), jnp.float32), "ln1_b": jnp.zeros((E,), jnp.float32),
            "ln2_g": jnp.ones((E,), jnp.float32), "ln2_b": jnp.zeros((E,), jnp.float32),
            "ln3_g": jnp.ones((E,), jnp.float32), "ln3_b": jnp.zeros((E,), jnp.float32),
        })
    return p


def qwen_forward(params, cfg, audio_latent, text_ids):
    E, V, H = cfg["n_embd"], cfg["vocab_size"], cfg["n_head"]
    B, Sa, A = audio_latent.shape
    St = text_ids.shape[1]
    scale = 1.0 / math.sqrt(E // H)

    # audio_proj -> decoder memory (bf16 activations from here on)
    mem2d = linear(audio_latent.reshape(-1, A),
                   params["audio_proj_w"], params["audio_proj_b"])  # [B*Sa, E]

    # fused embedding gather + positional encoding (dropout == identity, eval)
    x2d = embed_pos(text_ids, params["tok_emb"], params["pe"]).reshape(-1, E)

    # TransformerDecoder: post-norm, ReLU FFN, no masks, eval mode
    for lp in params["layers"]:
        # --- self-attention: fused QKV projection, 3 lane-dense outputs ---
        q, k, v = split_linear(x2d, lp["sa_qkv_w"], lp["sa_qkv_b"], 3)
        sa = attention(q.reshape(B, St, E), k.reshape(B, St, E),
                       v.reshape(B, St, E), H, scale).reshape(-1, E)
        x2d = proj_residual_ln(sa, lp["sa_out_w"], lp["sa_out_b"], x2d,
                               lp["ln1_g"], lp["ln1_b"])

        # --- cross-attention: Q from x, fused KV from memory ---
        qc = linear(x2d, lp["ca_q_w"], lp["ca_q_b"]).reshape(B, St, E)
        kc, vc = split_linear(mem2d, lp["ca_kv_w"], lp["ca_kv_b"], 2)
        ca = attention(qc, kc.reshape(B, Sa, E), vc.reshape(B, Sa, E),
                       H, scale).reshape(-1, E)
        x2d = proj_residual_ln(ca, lp["ca_out_w"], lp["ca_out_b"], x2d,
                               lp["ln2_g"], lp["ln2_b"])

        # --- FFN: two K-tiled matmuls (ReLU epilogue, then residual + LN) ---
        h = linear(x2d, lp["w1"], lp["b1"], relu=True)              # [M, F]
        x2d = proj_residual_ln(h, lp["w2"], lp["b2"], x2d,
                               lp["ln3_g"], lp["ln3_b"])

    # lm_head (tied to the token embedding), logits emitted in f32
    logits = linear(x2d, params["lm_head_w"], params["lm_head_b"],
                    out_dtype=jnp.float32).reshape(B, St, V)
    return [None, logits]


# ----------------------------------- main ------------------------------------

if __name__ == "__main__":
    cfg = dict(block_size=16, audio_latent_dim=16, vocab_size=64,
               n_layer=2, n_head=4, n_embd=32)
    B, S_audio, S_text = 2, 8, 8

    root = jax.random.PRNGKey(0)
    k_params, k_audio, k_text = jax.random.split(root, 3)

    params = init_params(k_params, cfg)
    audio_latent = jax.random.normal(
        k_audio, (B, S_audio, cfg["audio_latent_dim"]), dtype=jnp.float32)
    text_ids = jax.random.randint(
        k_text, (B, S_text), 0, cfg["vocab_size"], dtype=jnp.int32)

    _, logits = qwen_forward(params, cfg, audio_latent, text_ids)
    jax.block_until_ready(logits)
    assert logits.shape == (B, S_text, cfg["vocab_size"])
    assert bool(jnp.all(jnp.isfinite(logits)))
    print("KERNEL_OK")
</pallas_src>

<mosaic_0001>
module attributes {stable_mosaic.version = 11 : i64} {
  func.func @_linear_kernel(%arg0: i32, %arg1: i32, %arg2: i32, %arg3: memref<16x16xbf16, #tpu.memory_space<vmem>>, %arg4: memref<16x32xbf16, #tpu.memory_space<vmem>>, %arg5: memref<1x32xf32, #tpu.memory_space<vmem>>, %arg6: memref<16x32xbf16, #tpu.memory_space<vmem>>, %arg7: memref<16x32xf32, #tpu.memory_space<vmem>>) attributes {dimension_semantics = [#tpu.dimension_semantics<parallel>, #tpu.dimension_semantics<parallel>, #tpu.dimension_semantics<arbitrary>], iteration_bounds = array<i64: 1, 1, 1>, scalar_prefetch = 0 : i64, scratch_operands = 1 : i64, tpu.core_type = #tpu.core_type<tc>, window_params = [{transform_indices = @transform_0, window_bounds = array<i64: 16, 16>}, {transform_indices = @transform_1, window_bounds = array<i64: 16, 32>}, {transform_indices = @transform_2, window_bounds = array<i64: 1, 32>}, {transform_indices = @transform_3, window_bounds = array<i64: 16, 32>}]} {
    %c0_i32 = arith.constant 0 : i32
    %0 = arith.cmpi eq, %arg2, %c0_i32 : i32
    %1 = arith.extui %0 : i1 to i32
    %c0_i32_0 = arith.constant 0 : i32
    %2 = arith.cmpi ne, %1, %c0_i32_0 : i32
    scf.if %2 {
      %cst_10 = arith.constant 0.000000e+00 : f32
      %12 = vector.broadcast %cst_10 : f32 to vector<16x32xf32>
      %c0_11 = arith.constant 0 : index
      %c0_12 = arith.constant 0 : index
      %13 = vector.load %arg7[%c0_11, %c0_12] : memref<16x32xf32, #tpu.memory_space<vmem>>, vector<16x32xf32>
      tpu.vector_store %arg7[%c0_11, %c0_12], %12 {strides = array<i32>} : memref<16x32xf32, #tpu.memory_space<vmem>>, vector<16x32xf32>,
    } else {
    }
    %c0 = arith.constant 0 : index
    %c0_1 = arith.constant 0 : index
    %3 = vector.load %arg7[%c0, %c0_1] : memref<16x32xf32, #tpu.memory_space<vmem>>, vector<16x32xf32>
    %c0_2 = arith.constant 0 : index
    %c0_3 = arith.constant 0 : index
    %4 = vector.load %arg3[%c0_2, %c0_3] : memref<16x16xbf16, #tpu.memory_space<vmem>>, vector<16x16xbf16>
    %c0_4 = arith.constant 0 : index
    %c0_5 = arith.constant 0 : index
    %5 = vector.load %arg4[%c0_4, %c0_5] : memref<16x32xbf16, #tpu.memory_space<vmem>>, vector<16x32xbf16>
    %cst = arith.constant dense<0.000000e+00> : vector<16x32xf32>
    %6 = tpu.matmul %4, %5, %cst {dimension_numbers = #tpu.dot_dimension_numbers<[1], [0], [0], [1], [0, 0, 1, 1], [], []>} : vector<16x16xbf16>, vector<16x32xbf16>, vector<16x32xf32> -> vector<16x32xf32>
    %7 = arith.addf %3, %6 : vector<16x32xf32>
    %c0_6 = arith.constant 0 : index
    %c0_7 = arith.constant 0 : index
    %8 = vector.load %arg7[%c0_6, %c0_7] : memref<16x32xf32, #tpu.memory_space<vmem>>, vector<16x32xf32>
    tpu.vector_store %arg7[%c0_6, %c0_7], %7 {strides = array<i32>} : memref<16x32xf32, #tpu.memory_space<vmem>>, vector<16x32xf32>,
    %c0_i32_8 = arith.constant 0 : i32
    %9 = arith.cmpi eq, %arg2, %c0_i32_8 : i32
    %10 = arith.extui %9 : i1 to i32
    %c0_i32_9 = arith.constant 0 : i32
    %11 = arith.cmpi ne, %10, %c0_i32_9 : i32
    scf.if %11 {
      %c0_10 = arith.constant 0 : index
      %c0_11 = arith.constant 0 : index
      %12 = vector.load %arg7[%c0_10, %c0_11] : memref<16x32xf32, #tpu.memory_space<vmem>>, vector<16x32xf32>
      %c0_12 = arith.constant 0 : index
      %c0_13 = arith.constant 0 : index
      %13 = vector.load %arg5[%c0_12, %c0_13] : memref<1x32xf32, #tpu.memory_space<vmem>>, vector<1x32xf32>
      %14 = vector.broadcast %13 : vector<1x32xf32> to vector<16x32xf32>
      %15 = arith.addf %12, %14 : vector<16x32xf32>
      %16 = arith.truncf %15 : vector<16x32xf32> to vector<16x32xbf16>
      %c0_14 = arith.constant 0 : index
      %c0_15 = arith.constant 0 : index
      %17 = vector.load %arg6[%c0_14, %c0_15] : memref<16x32xbf16, #tpu.memory_space<vmem>>, vector<16x32xbf16>
      tpu.vector_store %arg6[%c0_14, %c0_15], %16 {strides = array<i32>} : memref<16x32xbf16, #tpu.memory_space<vmem>>, vector<16x32xbf16>,
    } else {
    }
    return
  }
  func.func @transform_0(%arg0: i32, %arg1: i32, %arg2: i32) -> (i32, i32) {
    %c0_i32 = arith.constant 0 : i32
    return %arg0, %arg2 : i32, i32
  }
  func.func @transform_1(%arg0: i32, %arg1: i32, %arg2: i32) -> (i32, i32) {
    %c0_i32 = arith.constant 0 : i32
    return %arg2, %arg1 : i32, i32
  }
  func.func @transform_2(%arg0: i32, %arg1: i32, %arg2: i32) -> (i32, i32) {
    %c0_i32 = arith.constant 0 : i32
    %c0_i32_0 = arith.constant 0 : i32
    return %c0_i32, %arg1 : i32, i32
  }
  func.func @transform_3(%arg0: i32, %arg1: i32, %arg2: i32) -> (i32, i32) {
    %c0_i32 = arith.constant 0 : i32
    return %arg0, %arg1 : i32, i32
  }
}

</mosaic_0001>

<bundles_post_ra>
// kernel: tpu_custom_call.1
= control target key start
LH: loop header
LB: loop body
LE: loop exit
PB: predicated region body
PF: predicated region fallthrough
CT: control target
= control target key end

     0   :  { %8 = vsyncpa [#allocation4], 0  ;;  %s278_s0 = inlined_call_operand.hbm [shape: bf16[16,16], index: 0, kind: input, shape index: {}]   ;;  %s279_s1 = inlined_call_operand.hbm [shape: bf16[16,32], index: 1, kind: input, shape index: {}]   ;;  %s280_s2 = inlined_call_operand.vmem [shape: f32[1,32], index: 2, kind: input, shape index: {}]   ;;  %s281_s3 = inlined_call_operand.hbm [shape: bf16[16,32], index: 3, kind: output, shape index: {}]  }
   0x1   :  { %9 = vsyncpa [#allocation7], 0 }
   0x2   :  { %10 = vsyncpa [#allocation5], 0  ;;  %s15_s14 = sshll.u32 %s278_s0, 4  ;;  %s227_s15 = smov [#allocation3]   ;;  %s16_s14 = int_to_ptr.hbm [resolvable:$true] %s15_s14 }
   0x3   :  { %s17_s16 = sshll.u32 %s227_s15, 4  ;;  %s28_s19 = sshll.u32 %s279_s1, 4  ;;  %s18_s16 = int_to_ptr.vmem [resolvable:$true] %s17_s16  ;;  %s29_s19 = int_to_ptr.hbm [resolvable:$true] %s28_s19 }
   0x4   :  { %s228_s20 = smov 64   ;;  %s229_s21 = smov 4  }
   0x5   :  { %23 = dma.hbm_to_vmem [thread:$0]  %s16_s14, 128, %s18_s16, [#allocation4], %s228_s20, %s228_s20, %s229_s21  }
   0x6   :  { %s230_s22 = smov [#allocation6]  }
   0x7   :  { %s30_s23 = sshll.u32 %s230_s22, 4  ;;  %s31_s23 = int_to_ptr.vmem [resolvable:$true] %s30_s23 }
   0x8   :  { %36 = dma.hbm_to_vmem [thread:$0]  %s29_s19, 128, %s31_s23, [#allocation7], %s228_s20, %s228_s20, %s229_s21  }
   0x9   :  { %221 = dma.done.wait [#allocation4], 128  }
   0xa   :  { %222 = vsyncadd [#allocation4], 4294967168 }
   0xb   :  { %223 = dma.done.wait [#allocation7], 128  }
   0xc   :  { %224 = vsyncadd [#allocation7], 4294967168  ;;  %vm52_vm0 = vcmask 261120   ;;  %v231_v0 = vmov 0.0   ;;  %v141_v1 = vld [vmem:[#allocation6] sm:$0xff]  ;;  %v140_v2 = vld [vmem:[#allocation3] sm:$0xff] }
   0xd   :  { %53 = vst.msk [vmem:[#allocation2] sm:$0xff] %vm52_vm0, %v231_v0  ;;  %83 = vmatpush.bf16.msra.mxu0 %v141_v1  ;;  %vm72_vm1 = vcmask 130048   ;;  %v148_v7 = vld [vmem:[%s280_s2] ss:$0 sm:$0xff]  ;;  %vm108_vm2 = vcmask 257024   ;;  %s232_s24 = smov [#allocation8]  }
   0xe   :  { %54 = vst.msk [vmem:[#allocation2 + $0x8] sm:$0xff] %vm52_vm0, %v231_v0  ;;  %s115_s25 = sshll.u32 %s232_s24, 4  ;;  %s117_s28 = sshll.u32 %s281_s3, 4  ;;  %s116_s25 = int_to_ptr.vmem [resolvable:$true] %s115_s25  ;;  %s118_s28 = int_to_ptr.hbm [resolvable:$true] %s117_s28 }
  0x10   :  { %139 = vmatmul.msk.bf16.vlgmr.msra.gmra.mxu0 %vm72_vm1, %v140_v2 }
  0x14   :  { %v55_v3 = vld [vmem:[#allocation2] sm:$0xff] }
  0x15   :  { %v56_v6 = vld [vmem:[#allocation2 + $0x8] sm:$0xff] }
  0x8d   :  { %v85_v4 = vpop.f32.mrf.mxu0 }
  0x8e   :  { %v90_v5 = vadd.f32 %v85_v4, %v55_v3 }
  0x90   :  { %93 = vst.msk [vmem:[#allocation2] sm:$0xff] %vm52_vm0, %v90_v5 }
  0x95   :  { %v87_v8 = vpop.f32.mrf.mxu0 }
  0x96   :  { %v91_v9 = vadd.f32 %v87_v8, %v56_v6 }
  0x97   :  { %v98_v10 = vld [vmem:[#allocation2] sm:$0xff] }
  0x98   :  { %94 = vst.msk [vmem:[#allocation2 + $0x8] sm:$0xff] %vm52_vm0, %v91_v9  ;;  %v104_v11 = vadd.f32 %v148_v7, %v98_v10 }
  0x9a   :  { %v106_v12 = vpack.c.bf16 %v104_v11, %v104_v11 }
  0x9c   :  { %109 = vst.msk [vmem:[#allocation8] sm:$0xf] %vm108_vm2, %v106_v12 }
  0x9f   :  { %v99_v13 = vld [vmem:[#allocation2 + $0x8] sm:$0xff] }
  0xa0   :  { %v105_v14 = vadd.f32 %v148_v7, %v99_v13 }
  0xa2   :  { %v107_v15 = vpack.c.bf16 %v105_v14, %v105_v14 }
  0xa4   :  { %110 = vst.msk [vmem:[#allocation8 + $0x4] sm:$0xf] %vm108_vm2, %v107_v15 }
  0xa5   :  { %123 = dma.vmem_to_hbm [thread:$0]  %s116_s25, 128, %s118_s28, [#allocation5], %s228_s20, %s228_s20, %s229_s21  }
  0xa6   :  { %225 = dma.done.wait [#allocation5], 128  }
  0xa7   :  { %226 = vsyncadd [#allocation5], 4294967168 }
  0xa8   :  { %128 = vsyncpa [#allocation4], 1 }
  0xa9   :  { %129 = vsyncpa [#allocation7], 1 }
  0xaa   :  { %130 = vsyncpa [#allocation5], 1 }

</bundles_post_ra>
